<compile_context>
chip_gen: v5e
topology: v5e:2x2
jax: 0.10.0
libtpu: 0.0.40
codegen_flags: <defaults>
</compile_context>

<pallas_src>
import functools
import math

import jax
import jax.numpy as jnp
from jax.experimental import pallas as pl
from jax.experimental.pallas import tpu as pltpu

# Large finite negative fill for the causal mask (avoids inf-inf / NaN hazards
# if the kernel is ever tiled over K/V).
_NEG_INF = -1e30


def _head_kernel(x_ref, w_ref, o_ref, *, batch, seq):
    # x_ref: (B*T, C) bf16 ; w_ref: (C, 3H) bf16 fused [q | k | v] ; o_ref: (B*T, H) f32
    C = x_ref.shape[1]
    H = o_ref.shape[1]

    # Fused projection: one MXU pass with M = B*T, N = 3H, f32 accumulation.
    qkv = jnp.dot(x_ref[...], w_ref[...],
                  preferred_element_type=jnp.float32)            # (B*T, 3H) f32
    qkv = qkv.reshape(batch, seq, 3 * H)                         # (B, T, 3H)
    q = qkv[..., :H]
    k = qkv[..., H:2 * H]
    v = qkv[..., 2 * H:]

    # Attention logits: contract the last dims of q and k directly
    # (no explicit transpose of k). Scaled by 1/sqrt(C) to match the module.
    wei = jnp.einsum(
        "bqd,bkd->bqk",
        q.astype(jnp.bfloat16), k.astype(jnp.bfloat16),
        preferred_element_type=jnp.float32,
    ) * (1.0 / math.sqrt(C))                                     # (B, T, T) f32

    # Causal (lower-triangular) mask with a finite large-negative fill.
    row = jax.lax.broadcasted_iota(jnp.int32, (seq, seq), 0)
    col = jax.lax.broadcasted_iota(jnp.int32, (seq, seq), 1)
    wei = jnp.where((col <= row)[None, :, :], wei, _NEG_INF)

    # Numerically stable softmax (kept in f32); the 1/sum normalization is
    # folded into the (B, T, H) epilogue after the p @ v matmul.
    m = jnp.max(wei, axis=-1, keepdims=True)                     # (B, T, 1)
    e = jnp.exp(wei - m)                                         # (B, T, T)
    s = jnp.sum(e, axis=-1, keepdims=True)                       # (B, T, 1)

    # Dropout on the attention weights: identity (inference mode).

    acc = jnp.einsum(
        "bqk,bkd->bqd",
        e.astype(jnp.bfloat16), v.astype(jnp.bfloat16),
        preferred_element_type=jnp.float32,
    )                                                            # (B, T, H) f32
    out = acc * pl.reciprocal(s, approx=False)                   # exact; tiny (B,T,1)
    o_ref[...] = out.reshape(batch * seq, H).astype(o_ref.dtype)


def fuse_head_weights(w_key, w_query, w_value):
    """Init-time weight fusion: columns ordered [q | k | v], stored bf16.

    w_*: (C, H) f32 (= nn.Linear.weight.T). Do this ONCE, not per forward.
    """
    return jnp.concatenate([w_query, w_key, w_value], axis=1).astype(jnp.bfloat16)


def head_forward(x, w_qkv):
    """x: (B, T, C) f32; w_qkv: (C, 3H) bf16 from fuse_head_weights. Returns (B, T, H) f32."""
    B, T, C = x.shape
    H = w_qkv.shape[1] // 3

    # Cast x once in the wrapper (halves DMA bytes, no in-kernel casts) and
    # collapse batch into the matmul M dimension.
    x2d = x.reshape(B * T, C).astype(jnp.bfloat16)

    out = pl.pallas_call(
        functools.partial(_head_kernel, batch=B, seq=T),
        out_shape=jax.ShapeDtypeStruct((B * T, H), jnp.float32),
        in_specs=[
            pl.BlockSpec(memory_space=pltpu.MemorySpace.VMEM),
            pl.BlockSpec(memory_space=pltpu.MemorySpace.VMEM),
        ],
        out_specs=pl.BlockSpec(memory_space=pltpu.MemorySpace.VMEM),
    )(x2d, w_qkv)
    return out.reshape(B, T, H)


def _reference(x, w_key, w_query, w_value):
    """Pure-JAX f32 reference mirroring the PyTorch forward (eval mode)."""
    B, T, C = x.shape
    k = x @ w_key
    q = x @ w_query
    v = x @ w_value
    wei = (q @ jnp.swapaxes(k, -2, -1)) / math.sqrt(C)
    mask = jnp.tril(jnp.ones((T, T), dtype=bool))
    wei = jnp.where(mask[None, :, :], wei, -jnp.inf)
    wei = jax.nn.softmax(wei, axis=-1)
    return wei @ v


if __name__ == "__main__":
    # Small shapes consistent with the module: batch=2, seq=8, emb=32, head_size=16
    B, T, C, H = 2, 8, 32, 16

    key = jax.random.PRNGKey(0)
    kx, kk, kq, kv = jax.random.split(key, 4)

    x = jax.random.normal(kx, (B, T, C), dtype=jnp.float32)
    # Deterministic init mimicking nn.Linear(emb, head_size, bias=False):
    # uniform(-1/sqrt(emb), 1/sqrt(emb)), stored as (C, H) = weight.T
    bound = 1.0 / math.sqrt(C)
    w_key = jax.random.uniform(kk, (C, H), jnp.float32, -bound, bound)
    w_query = jax.random.uniform(kq, (C, H), jnp.float32, -bound, bound)
    w_value = jax.random.uniform(kv, (C, H), jnp.float32, -bound, bound)

    # Weight fusion happens once, outside the per-forward hot path.
    w_qkv = fuse_head_weights(w_key, w_query, w_value)

    out = jax.block_until_ready(head_forward(x, w_qkv))

    ref = _reference(x, w_key, w_query, w_value)
    assert out.shape == (B, T, H)
    max_err = float(jnp.max(jnp.abs(out - ref)))
    # bf16 MXU operands => relaxed tolerance vs the f32 reference.
    assert jnp.allclose(out, ref, atol=5e-2, rtol=5e-2), (
        f"mismatch vs reference (max abs err {max_err:.4e})"
    )

    print("KERNEL_OK")
</pallas_src>

<mosaic_0001>
module attributes {stable_mosaic.version = 11 : i64} {
  func.func @_head_kernel(%arg0: memref<16x32xbf16, #tpu.memory_space<vmem>>, %arg1: memref<32x48xbf16, #tpu.memory_space<vmem>>, %arg2: memref<16x16xf32, #tpu.memory_space<vmem>>) attributes {dimension_semantics = [], scalar_prefetch = 0 : i64, scratch_operands = 0 : i64, tpu.core_type = #tpu.core_type<tc>} {
    %c0 = arith.constant 0 : index
    %c0_0 = arith.constant 0 : index
    %0 = vector.load %arg0[%c0, %c0_0] : memref<16x32xbf16, #tpu.memory_space<vmem>>, vector<16x32xbf16>
    %c0_1 = arith.constant 0 : index
    %c0_2 = arith.constant 0 : index
    %1 = vector.load %arg1[%c0_1, %c0_2] : memref<32x48xbf16, #tpu.memory_space<vmem>>, vector<32x48xbf16>
    %cst = arith.constant dense<0.000000e+00> : vector<16x48xf32>
    %2 = tpu.matmul %0, %1, %cst {dimension_numbers = #tpu.dot_dimension_numbers<[1], [0], [0], [1], [0, 0, 1, 1], [], []>} : vector<16x32xbf16>, vector<32x48xbf16>, vector<16x48xf32> -> vector<16x48xf32>
    %3 = vector.shape_cast %2 : vector<16x48xf32> to vector<2x8x48xf32>
    %4 = vector.extract_strided_slice %3 {offsets = [0, 0, 0], sizes = [2, 8, 16], strides = [1, 1, 1]} : vector<2x8x48xf32> to vector<2x8x16xf32>
    %5 = vector.extract_strided_slice %3 {offsets = [0, 0, 16], sizes = [2, 8, 16], strides = [1, 1, 1]} : vector<2x8x48xf32> to vector<2x8x16xf32>
    %6 = vector.extract_strided_slice %3 {offsets = [0, 0, 32], sizes = [2, 8, 16], strides = [1, 1, 1]} : vector<2x8x48xf32> to vector<2x8x16xf32>
    %7 = arith.truncf %4 : vector<2x8x16xf32> to vector<2x8x16xbf16>
    %8 = arith.truncf %5 : vector<2x8x16xf32> to vector<2x8x16xbf16>
    "tpu.trace_start"() <{level = 10 : i32, message = "bqd,bkd->bqk"}> : () -> ()
    %cst_3 = arith.constant dense<0.000000e+00> : vector<2x8x8xf32>
    %9 = tpu.matmul %7, %8, %cst_3 {dimension_numbers = #tpu.dot_dimension_numbers<[2], [2], [1], [1], [0, 0, 0, 1, 1, 1], [0], [0]>} : vector<2x8x16xbf16>, vector<2x8x16xbf16>, vector<2x8x8xf32> -> vector<2x8x8xf32>
    "tpu.trace_stop"() : () -> ()
    %cst_4 = arith.constant 0.176776692 : f32
    %10 = vector.broadcast %cst_4 : f32 to vector<2x8x8xf32>
    %11 = arith.mulf %9, %10 : vector<2x8x8xf32>
    %12 = tpu.iota {dimensions = array<i32: 0>} : vector<8x8xi32>
    %13 = tpu.iota {dimensions = array<i32: 1>} : vector<8x8xi32>
    %14 = arith.cmpi sle, %13, %12 : vector<8x8xi32>
    %15 = vector.shape_cast %14 : vector<8x8xi1> to vector<1x8x8xi1>
    %cst_5 = arith.constant -1.000000e+30 : f32
    %16 = vector.shape_cast %15 : vector<1x8x8xi1> to vector<1x8x8xi1>
    %17 = vector.broadcast %16 : vector<1x8x8xi1> to vector<2x8x8xi1>
    %18 = vector.broadcast %cst_5 : f32 to vector<2x8x8xf32>
    %19 = arith.select %17, %11, %18 : vector<2x8x8xi1>, vector<2x8x8xf32>
    %cst_6 = arith.constant dense<0xFF800000> : vector<2x8xf32>
    %20 = vector.multi_reduction <maximumf>, %19, %cst_6 [2] : vector<2x8x8xf32> to vector<2x8xf32>
    %21 = vector.shape_cast %20 : vector<2x8xf32> to vector<2x8x1xf32>
    %22 = vector.broadcast %21 : vector<2x8x1xf32> to vector<2x8x8xf32>
    %23 = arith.subf %19, %22 : vector<2x8x8xf32>
    %24 = math.exp %23 : vector<2x8x8xf32>
    %cst_7 = arith.constant dense<0.000000e+00> : vector<2x8xf32>
    %25 = vector.multi_reduction <add>, %24, %cst_7 [2] : vector<2x8x8xf32> to vector<2x8xf32>
    %26 = vector.shape_cast %25 : vector<2x8xf32> to vector<2x8x1xf32>
    %27 = arith.truncf %24 : vector<2x8x8xf32> to vector<2x8x8xbf16>
    %28 = arith.truncf %6 : vector<2x8x16xf32> to vector<2x8x16xbf16>
    "tpu.trace_start"() <{level = 10 : i32, message = "bqk,bkd->bqd"}> : () -> ()
    %cst_8 = arith.constant dense<0.000000e+00> : vector<2x8x16xf32>
    %29 = tpu.matmul %27, %28, %cst_8 {dimension_numbers = #tpu.dot_dimension_numbers<[2], [1], [1], [2], [0, 0, 0, 1, 1, 2], [0], [0]>} : vector<2x8x8xbf16>, vector<2x8x16xbf16>, vector<2x8x16xf32> -> vector<2x8x16xf32>
    "tpu.trace_stop"() : () -> ()
    %30 = tpu.reciprocal %26 : vector<2x8x1xf32> -> vector<2x8x1xf32>
    %31 = vector.broadcast %30 : vector<2x8x1xf32> to vector<2x8x16xf32>
    %32 = arith.mulf %29, %31 : vector<2x8x16xf32>
    %33 = vector.shape_cast %32 : vector<2x8x16xf32> to vector<16x16xf32>
    %c0_9 = arith.constant 0 : index
    %c0_10 = arith.constant 0 : index
    %34 = vector.load %arg2[%c0_9, %c0_10] : memref<16x16xf32, #tpu.memory_space<vmem>>, vector<16x16xf32>
    tpu.vector_store %arg2[%c0_9, %c0_10], %33 {strides = array<i32>} : memref<16x16xf32, #tpu.memory_space<vmem>>, vector<16x16xf32>,
    return
  }
}

</mosaic_0001>

<bundles_post_ra>
// kernel: tpu_custom_call.1
= control target key start
LH: loop header
LB: loop body
LE: loop exit
PB: predicated region body
PF: predicated region fallthrough
CT: control target
= control target key end

     0   :  { %7 = vsyncpa [#allocation3], 0  ;;  %s424_s0 = inlined_call_operand.hbm [shape: bf16[16,32], index: 0, kind: input, shape index: {}]   ;;  %s425_s1 = inlined_call_operand.hbm [shape: bf16[32,48], index: 1, kind: input, shape index: {}]   ;;  %s426_s2 = inlined_call_operand.hbm [shape: f32[16,16], index: 2, kind: output, shape index: {}]  }
   0x1   :  { %8 = vsyncpa [#allocation6], 0 }
   0x2   :  { %9 = vsyncpa [#allocation4], 0  ;;  %s14_s11 = sshll.u32 %s424_s0, 4  ;;  %s379_s12 = smov [#allocation2]   ;;  %s15_s11 = int_to_ptr.hbm [resolvable:$true] %s14_s11 }
   0x3   :  { %s16_s13 = sshll.u32 %s379_s12, 4  ;;  %s27_s16 = sshll.u32 %s425_s1, 4  ;;  %s17_s13 = int_to_ptr.vmem [resolvable:$true] %s16_s13  ;;  %s28_s16 = int_to_ptr.hbm [resolvable:$true] %s27_s16 }
   0x4   :  { %s380_s17 = smov 64   ;;  %s381_s18 = smov 4  }
   0x5   :  { %22 = dma.hbm_to_vmem [thread:$0]  %s15_s11, 128, %s17_s13, [#allocation3], %s380_s17, %s380_s17, %s381_s18  }
   0x6   :  { %s382_s19 = smov [#allocation5]  }
   0x7   :  { %s29_s20 = sshll.u32 %s382_s19, 4  ;;  %s30_s20 = int_to_ptr.vmem [resolvable:$true] %s29_s20 }
   0x8   :  { %35 = dma.hbm_to_vmem [thread:$0]  %s28_s16, 256, %s30_s20, [#allocation6], %s380_s17, %s380_s17, %s381_s18  }
   0x9   :  { %373 = dma.done.wait [#allocation3], 128  }
   0xa   :  { %374 = vsyncadd [#allocation3], 4294967168 }
   0xb   :  { %375 = dma.done.wait [#allocation6], 256  }
   0xc   :  { %376 = vsyncadd [#allocation6], 4294967040  ;;  %v283_v0 = vld [vmem:[#allocation5 + $0x8] sm:$0xff]  ;;  %v282_v1 = vld [vmem:[#allocation5] sm:$0xff]  ;;  %vm68_vm0 = vcmask 261120   ;;  %s383_s0 = smov 112   ;;  %v139_v15 = vlaneseq }
   0xd   :  { %78 = vmatpush.bf16.msra.mxu0 %v283_v0  ;;  %v281_v2 = vld [vmem:[#allocation2] sm:$0xff]  ;;  %vm93_vm1 = vcmask 130048   ;;  %vm148_vm3 = vcmask 64512   ;;  %s384_s1 = smov 96   ;;  %vm174_vm4 = vcmask 1043456   ;;  %s385_s21 = smov [#allocation7]  }
   0xe   :  { %v140_v16 = vshrl.u32 %v139_v15, 7  ;;  %v142_v17 = vand.u32 127, %v139_v15  ;;  %s248_s22 = sshll.u32 %s385_s21, 4  ;;  %s250_s25 = sshll.u32 %s426_s2, 4  ;;  %s249_s22 = int_to_ptr.vmem [resolvable:$true] %s248_s22  ;;  %s251_s25 = int_to_ptr.hbm [resolvable:$true] %s250_s25 }
   0xf   :  { %s386_s26 = smov 128   ;;  %s387_s27 = smov 8  }
  0x10   :  { %vm143_vm2 = vcmp.le.s32.totalorder %v142_v17, %v140_v16 }
  0x11   :  { %79 = vmatpush.bf16.msra.mxu0 %v282_v1 }
  0x14   :  { %276 = vmatmul.msk.bf16.vlgmr.msra.gmra.mxu0 %vm68_vm0, %v281_v2 }
  0x91   :  { %v81_v3 = vpop.f32.mrf.mxu0 }
  0x92   :  { %v86_v4 = vpack.c.bf16 %v81_v3, %v81_v3 }
  0x94   :  { %v89_v5 = vunpack.c.l.b16 %v86_v4 }
  0x96   :  { %v90_v6 = vpack.c.b16 %v89_v5, %v89_v5 }
  0x98   :  { %91 = vrot.lane.b32.xlu0 %v90_v6, %s383_s0 }
  0x99   :  { %v83_v7 = vpop.f32.mrf.mxu0 }
  0x9a   :  { %v87_v8 = vpack.c.bf16 %v83_v7, %v83_v7 }
  0x9c   :  { %v114_v9 = vunpack.c.l.b16 %v87_v8 }
  0x9e   :  { %v115_v10 = vpack.c.b16 %v114_v9, %v114_v9 }
  0xa0   :  { %116 = vrot.lane.b32.xlu0 %v115_v10, %s383_s0 }
 0x10a   :  { %v92_v11 = vpop.permute.xlu0 %91 }
 0x10b   :  { %v98_v12 = vsel %vm93_vm1, %v92_v11, 0 }
 0x10c   :  { %107 = vmatpush.bf16.xpose.msra.mxu1 %v98_v12 }
 0x112   :  { %v117_v13 = vpop.permute.xlu0 %116 }
 0x113   :  { %277 = vmatmul.msk.bf16.vlgmr.msra.gmra.mxu1 %vm93_vm1, %v86_v4  ;;  %v122_v14 = vsel %vm93_vm1, %v117_v13, 0 }
 0x114   :  { %131 = vmatpush.bf16.xpose.msra.mxu2 %v122_v14 }
 0x11b   :  { %278 = vmatmul.msk.bf16.vlgmr.msra.gmra.mxu2 %vm93_vm1, %v87_v8 }
 0x190   :  { %v109_v18 = vpop.f32.mrf.mxu1 }
 0x191   :  { %v137_v19 = vmul.f32 0.17677669, %v109_v18 }
 0x193   :  { %v146_v20 = vsel %vm143_vm2, %v137_v19, -1e+30 }
 0x194   :  { %v149_v21 = vsel %vm148_vm3, %v146_v20, -inf }
 0x195   :  { %150 = vmax.xlane.f32.xlu1 %v149_v21 }
 0x198   :  { %v111_v22 = vpop.f32.mrf.mxu1 }
 0x19e   :  { %v133_v23 = vpop.f32.mrf.mxu2 }
 0x19f   :  { %v138_v24 = vmul.f32 0.17677669, %v133_v23 }
 0x1a1   :  { %v147_v25 = vsel %vm143_vm2, %v138_v24, -1e+30 }
 0x1a2   :  { %v152_v26 = vsel %vm148_vm3, %v147_v25, -inf }
 0x1a3   :  { %153 = vmax.xlane.f32.xlu2 %v152_v26 }
 0x1a6   :  { %v135_v27 = vpop.f32.mrf.mxu2 }
 0x1ae   :  { %169 = vrot.lane.b32.xlu1 %v90_v6, %s384_s1 }
 0x1bb   :  { %191 = vrot.lane.b32.xlu2 %v115_v10, %s384_s1 }
 0x208   :  { %v151_v28 = vpop.xlane.xlu1 %150 }
 0x209   :  { %v155_v29 = vsub.f32 %v146_v20, %v151_v28 }
 0x20b   :  { %v157_v30 = vmul.f32 1.442695, %v155_v29 }
 0x20d   :  { %293 = vpow2.f32 %v157_v30 }
 0x213   :  { %v294_v31 = vpop.eup %293 }
 0x214   :  { %v161_v32 = vsel %vm148_vm3, %v294_v31, 0.0  ;;  %v167_v42 = vpack.c.bf16 %v294_v31, %v294_v31 }
 0x215   :  { %162 = vadd.xlane.f32.xlu0 %v161_v32 }
 0x216   :  { %v154_v33 = vpop.xlane.xlu2 %153 }
 0x217   :  { %v156_v34 = vsub.f32 %v147_v25, %v154_v33 }
 0x219   :  { %v159_v35 = vmul.f32 1.442695, %v156_v34 }
 0x21b   :  { %295 = vpow2.f32 %v159_v35 }
 0x21e   :  { %v192_v36 = vpop.permute.xlu2 %191 }
 0x21f   :  { %v197_v41 = vsel %vm174_vm4, %v192_v36, 0 }
 0x220   :  { %v170_v37 = vpop.permute.xlu1 %169 }
 0x221   :  { %v296_v38 = vpop.eup %295  ;;  %v176_v39 = vsel %vm174_vm4, %v170_v37, 0 }
 0x222   :  { %185 = vmatpush.bf16.msra.mxu3 %v176_v39  ;;  %v164_v40 = vsel %vm148_vm3, %v296_v38, 0.0  ;;  %v168_v43 = vpack.c.bf16 %v296_v38, %v296_v38 }
 0x223   :  { %165 = vadd.xlane.f32.xlu2 %v164_v40 }
 0x225   :  { %279 = vmatmul.msk.bf16.vlgmr.msra.gmra.mxu3 %vm148_vm3, %v167_v42 }
 0x226   :  { %206 = vmatpush.bf16.msrb.mxu3 %v197_v41 }
 0x235   :  { %280 = vmatmul.msk.bf16.vlgmr.msrb.gmra.mxu3 %vm148_vm3, %v168_v43 }
 0x288   :  { %v163_v44 = vpop.xlane.xlu0 %162 }
 0x289   :  { %297 = vrcp.f32 %v163_v44  ;;  %v223_v52 = vand.u32 2147483648, %v163_v44  ;;  %vm217_vm6 = vweird.f32 %v163_v44  ;;  %v221_v53 = vand.u32 2147483647, %v163_v44 }
 0x28b   :  { %v224_v56 = vor.u32 1.1754944e-38, %v223_v52  ;;  %vm222_vm8 = vcmp.eq.f32.partialorder %v221_v53, 8.507059e+37 }
 0x28f   :  { %v298_v45 = vpop.eup %297 }
 0x290   :  { %v213_v46 = vmul.f32 %v298_v45, %v163_v44  ;;  %vm218_vm5 = vweird.f32 %v298_v45 }
 0x291   :  { %vm219_vm7 = vmor %vm217_vm6, %vm218_vm5 }
 0x292   :  { %v214_v47 = vsub.f32 1.0, %v213_v46 }
 0x294   :  { %v215_v49 = vmul.f32 %v298_v45, %v214_v47 }
 0x296   :  { %v166_v48 = vpop.xlane.xlu2 %165  ;;  %v216_v50 = vadd.f32 %v298_v45, %v215_v49 }
 0x297   :  { %299 = vrcp.f32 %v166_v48  ;;  %v237_v0 = vand.u32 2147483648, %v166_v48  ;;  %vm231_vm10 = vweird.f32 %v166_v48  ;;  %v235_v1 = vand.u32 2147483647, %v166_v48 }
 0x298   :  { %v220_v55 = vsel %vm219_vm7, %v298_v45, %v216_v50 }
 0x299   :  { %v225_v58 = vsel %vm222_vm8, %v224_v56, %v220_v55  ;;  %v238_v3 = vor.u32 1.1754944e-38, %v237_v0  ;;  %vm236_vm12 = vcmp.eq.f32.partialorder %v235_v1, 8.507059e+37 }
 0x29d   :  { %v300_v51 = vpop.eup %299 }
 0x29e   :  { %v227_v54 = vmul.f32 %v300_v51, %v166_v48  ;;  %vm232_vm9 = vweird.f32 %v300_v51 }
 0x29f   :  { %vm233_vm11 = vmor %vm231_vm10, %vm232_vm9 }
 0x2a0   :  { %v228_v59 = vsub.f32 1.0, %v227_v54 }
 0x2a2   :  { %v229_v61 = vmul.f32 %v300_v51, %v228_v59 }
 0x2a4   :  { %v230_v63 = vadd.f32 %v300_v51, %v229_v61 }
 0x2a6   :  { %v234_v2 = vsel %vm233_vm11, %v300_v51, %v230_v63 }
 0x2a7   :  { %v239_v5 = vsel %vm236_vm12, %v238_v3, %v234_v2 }
 0x2a8   :  { %v187_v57 = vpop.f32.mrf.mxu3 }
 0x2a9   :  { %v240_v60 = vmul.f32 %v225_v58, %v187_v57 }
 0x2ab   :  { %242 = vst.msk [vmem:[#allocation7] sm:$0xff] %vm93_vm1, %v240_v60 }
 0x2b0   :  { %v189_v62 = vpop.f32.mrf.mxu3 }
 0x2b8   :  { %v208_v4 = vpop.f32.mrf.mxu3 }
 0x2b9   :  { %v241_v6 = vmul.f32 %v239_v5, %v208_v4 }
 0x2bb   :  { %243 = vst.msk [vmem:[#allocation7 + $0x8] sm:$0xff] %vm93_vm1, %v241_v6 }
 0x2bc   :  { %256 = dma.vmem_to_hbm [thread:$0]  %s249_s22, 256, %s251_s25, [#allocation4], %s386_s26, %s386_s26, %s387_s27  }
 0x2c0   :  { %v210_v7 = vpop.f32.mrf.mxu3 }
 0x2c1   :  { %377 = dma.done.wait [#allocation4], 256  }
 0x2c2   :  { %378 = vsyncadd [#allocation4], 4294967040 }
 0x2c3   :  { %261 = vsyncpa [#allocation3], 1 }
 0x2c4   :  { %262 = vsyncpa [#allocation6], 1 }
 0x2c5   :  { %263 = vsyncpa [#allocation4], 1 }

</bundles_post_ra>
